<compile_context>
chip_gen: v7x
topology: tpu7x:2x2x1
jax: 0.10.0
libtpu: 0.0.40
codegen_flags: <defaults>
</compile_context>

<pallas_src>
import functools

import jax
import jax.numpy as jnp
from jax import lax
from jax.experimental import pallas as pl
from jax.experimental.pallas import tpu as pltpu

HIDDEN = 128
HEAD_PAD = 128       # fused-head lane width: col 0 = discr, cols 1..classes = classifier
VMEM_LIMIT = 48 * 1024 * 1024   # safe on v5e/v6e (128 MiB) and v7x (64 MiB physical)


def _discriminator_kernel(
    x_ref,
    w1_ref, b1_ref,
    w2_ref, b2_ref,
    w3_ref, b3_ref,
    w4_ref, b4_ref,
    wh_ref, bh_ref,
    out_ref,
    *,
    classes: int,
):
    # (1, HEAD_PAD) column index / masks, hoisted above the matmuls and
    # broadcast over rows (no full-tile int32 iota per step).
    col = lax.broadcasted_iota(jnp.int32, (1, HEAD_PAD), 1)
    is_d = col == 0
    cls_mask = jnp.logical_and(col >= 1, col < 1 + classes)

    # Hoisted bias loads (each a (1, N) f32 row).
    b1 = b1_ref[...]
    b2 = b2_ref[...]
    b3 = b3_ref[...]
    b4 = b4_ref[...]
    bh = bh_ref[...]

    def relu_linear(h, w_ref, b):
        # bf16 x bf16 -> f32 accumulate on the MXU, bias + ReLU in f32 on the VPU.
        y = jnp.dot(h, w_ref[...], preferred_element_type=jnp.float32) + b
        return jnp.maximum(y, 0.0).astype(jnp.bfloat16)

    h = relu_linear(x_ref[...], w1_ref, b1)
    h = relu_linear(h, w2_ref, b2)
    h = relu_linear(h, w3_ref, b3)
    h = relu_linear(h, w4_ref, b4)

    # Fused head (layer 5 already folded into wh/bh in the wrapper):
    # col 0 = discriminator logit, cols 1..classes = classifier logits.
    logits = jnp.dot(h, wh_ref[...], preferred_element_type=jnp.float32) + bh

    # --- single-exp epilogue -------------------------------------------------
    # col 0         : exp(-z0)            -> sigmoid = 1 / (1 + exp(-z0))
    # class cols    : exp(z - m)          -> softmax = e / sum(e)
    # padding cols  : exp(-1e30 - m) = 0  -> output 0
    masked = jnp.where(cls_mask, logits, jnp.float32(-1e30))
    m = jnp.max(masked, axis=1, keepdims=True)
    t = jnp.where(is_d, -logits, masked - m)
    e = jnp.exp(t)
    s = jnp.sum(jnp.where(cls_mask, e, 0.0), axis=1, keepdims=True)

    num = jnp.where(is_d, 1.0, e)
    den = jnp.where(is_d, 1.0 + e, s)
    out_ref[...] = num / den   # exact divide: softmax rows sum to 1 within f32 rounding


def _round_up(n: int, m: int) -> int:
    return ((n + m - 1) // m) * m


def _choose_tb(B: int, C: int, block_b: int) -> int:
    """Batch tile: multiple of 16, >=2 grid steps when batch allows, VMEM-bounded."""
    b_pad = _round_up(B, 16)
    tb = min(_round_up(block_b, 16), b_pad)

    # v7x megacore: prefer at least 2 grid steps so both TensorCores get work.
    if tb >= b_pad and b_pad >= 32:
        tb = _round_up((b_pad + 1) // 2, 16)

    # VMEM budget: x double-buffers (bf16) + out double-buffers (f32) +
    # activation/epilogue temporaries must fit alongside the resident weights.
    weight_bytes = 2 * (
        C * HIDDEN * 2              # w1 (bf16, double-buffered even if resident)
        + 3 * HIDDEN * HIDDEN * 2   # w2..w4 (bf16)
        + HIDDEN * HEAD_PAD * 2     # fused head (bf16)
        + 5 * HEAD_PAD * 4          # bias rows (f32)
    )
    budget = VMEM_LIMIT - weight_bytes - (4 << 20)   # 4 MiB margin

    def tile_bytes(t: int) -> int:
        return (2 * t * C * 2            # x double buffers (bf16)
                + 2 * t * HEAD_PAD * 4   # out double buffers (f32)
                + 8 * t * HIDDEN * 4)    # f32 activation / epilogue temporaries

    while tb > 16 and tile_bytes(tb) > budget:
        tb = max(16, _round_up(tb // 2, 16))
    return tb


def init_params(key, channels: int, classes: int = 10):
    """Deterministic synthetic parameters (f32). Weights stored as (in, out)."""
    dims_in = [channels, HIDDEN, HIDDEN, HIDDEN, HIDDEN]
    params = []
    keys = jax.random.split(key, 7)
    for k, din in zip(keys[:5], dims_in):
        w = jax.random.normal(k, (din, HIDDEN), jnp.float32) * 0.05
        b = jnp.zeros((1, HIDDEN), jnp.float32)
        params.extend([w, b])
    wd = jax.random.normal(keys[5], (HIDDEN, 1), jnp.float32) * 0.05
    bd = jnp.zeros((1, 1), jnp.float32)
    params.extend([wd, bd])
    wc = jax.random.normal(keys[6], (HIDDEN, classes), jnp.float32) * 0.05
    bc = jnp.zeros((1, classes), jnp.float32)
    params.extend([wc, bc])
    return params


def discriminator_forward(x, params, classes: int = 10, block_b: int = 2048):
    (w1, b1, w2, b2, w3, b3, w4, b4, w5, b5, wd, bd, wc, bc) = params
    B, C = x.shape
    assert 1 + classes <= HEAD_PAD, "classes must fit in the 128-wide fused head"

    # --- batch tiling (multiples of 16 for bf16 sublane packing) -------------
    tb = _choose_tb(B, C, block_b)
    b_pad = _round_up(B, tb)
    if b_pad != B:
        x = jnp.pad(x, ((0, b_pad - B), (0, 0)))
    nb = b_pad // tb

    # --- operand prep: bf16 matmul inputs, layer-5 folded into fused head ----
    x_bf = x.astype(jnp.bfloat16)
    ws_bf = [w.astype(jnp.bfloat16) for w in (w1, w2, w3, w4)]
    biases = [b1, b2, b3, b4]

    wh = jnp.zeros((HIDDEN, HEAD_PAD), jnp.float32)
    wh = wh.at[:, 0:1].set(wd)
    wh = wh.at[:, 1:1 + classes].set(wc)
    bh = jnp.zeros((1, HEAD_PAD), jnp.float32)
    bh = bh.at[:, 0:1].set(bd)
    bh = bh.at[:, 1:1 + classes].set(bc)
    # Fold layer 5 (no ReLU follows it) into the head: exact up to rounding.
    wh_fused = (w5 @ wh).astype(jnp.bfloat16)   # (128, 128) bf16
    bh_fused = b5 @ wh + bh                     # (1, 128) f32

    in_arrays = [x_bf]
    for w, b in zip(ws_bf, biases):
        in_arrays.extend([w, b])
    in_arrays.extend([wh_fused, bh_fused])

    # --- specs ----------------------------------------------------------------
    def resident(arr):
        nd = arr.ndim
        return pl.BlockSpec(arr.shape, lambda i, _nd=nd: (0,) * _nd)

    in_specs = [pl.BlockSpec((tb, C), lambda i: (i, 0))]          # x: tiled over batch
    in_specs += [resident(a) for a in in_arrays[1:]]              # params: VMEM-resident

    out_shape = jax.ShapeDtypeStruct((b_pad, HEAD_PAD), jnp.float32)
    out_spec = pl.BlockSpec((tb, HEAD_PAD), lambda i: (i, 0))

    kernel = functools.partial(_discriminator_kernel, classes=classes)
    slab = pl.pallas_call(
        kernel,
        out_shape=out_shape,
        grid=(nb,),
        in_specs=in_specs,
        out_specs=out_spec,
        compiler_params=pltpu.CompilerParams(
            dimension_semantics=("parallel",),
            vmem_limit_bytes=VMEM_LIMIT,
        ),
    )(*in_arrays)

    d_out = slab[:B, 0:1]
    c_out = slab[:B, 1:1 + classes]
    return d_out, c_out


def reference_forward(x, params, classes: int = 10):
    """Pure-JAX f32 reference (matches the torch module)."""
    (w1, b1, w2, b2, w3, b3, w4, b4, w5, b5, wd, bd, wc, bc) = params
    h = x
    for w, b in ((w1, b1), (w2, b2), (w3, b3), (w4, b4)):
        h = jnp.maximum(h @ w + b, 0.0)
    h = h @ w5 + b5
    d = jax.nn.sigmoid(h @ wd + bd)
    c = jax.nn.softmax(h @ wc + bc, axis=1)
    return d, c


if __name__ == "__main__":
    B, C, CLASSES = 8, 4, 10
    key = jax.random.PRNGKey(0)
    kx, kp = jax.random.split(key)
    x = jax.random.normal(kx, (B, C), jnp.float32)
    params = init_params(kp, channels=C, classes=CLASSES)

    d_out, c_out = discriminator_forward(x, params, classes=CLASSES)
    jax.block_until_ready((d_out, c_out))

    assert d_out.shape == (B, 1)
    assert c_out.shape == (B, CLASSES)
    # sanity: sigmoid in (0,1), softmax rows sum to 1 (exact divide in-kernel)
    assert bool(jnp.all((d_out > 0.0) & (d_out < 1.0)))
    assert bool(jnp.allclose(jnp.sum(c_out, axis=1), 1.0, atol=1e-4))

    # correctness vs f32 reference (bf16 matmul operands -> loose tolerance)
    d_ref, c_ref = reference_forward(x, params, classes=CLASSES)
    assert bool(jnp.allclose(d_out, d_ref, atol=2e-2))
    assert bool(jnp.allclose(c_out, c_ref, atol=2e-2))

    print("KERNEL_OK")
</pallas_src>

<mosaic_0001>
module attributes {stable_mosaic.version = 11 : i64} {
  func.func @_discriminator_kernel(%arg0: i32, %arg1: memref<16x4xbf16, #tpu.memory_space<vmem>>, %arg2: memref<4x128xbf16, #tpu.memory_space<vmem>>, %arg3: memref<1x128xf32, #tpu.memory_space<vmem>>, %arg4: memref<128x128xbf16, #tpu.memory_space<vmem>>, %arg5: memref<1x128xf32, #tpu.memory_space<vmem>>, %arg6: memref<128x128xbf16, #tpu.memory_space<vmem>>, %arg7: memref<1x128xf32, #tpu.memory_space<vmem>>, %arg8: memref<128x128xbf16, #tpu.memory_space<vmem>>, %arg9: memref<1x128xf32, #tpu.memory_space<vmem>>, %arg10: memref<128x128xbf16, #tpu.memory_space<vmem>>, %arg11: memref<1x128xf32, #tpu.memory_space<vmem>>, %arg12: memref<16x128xf32, #tpu.memory_space<vmem>>) attributes {dimension_semantics = [#tpu.dimension_semantics<parallel>], iteration_bounds = array<i64: 1>, scalar_prefetch = 0 : i64, scratch_operands = 0 : i64, tpu.core_type = #tpu.core_type<tc>, window_params = [{transform_indices = @transform_0, window_bounds = array<i64: 16, 4>}, {pipeline_mode = #tpu.pipeline_mode<synchronous>, transform_indices = @transform_1, window_bounds = array<i64: 4, 128>}, {pipeline_mode = #tpu.pipeline_mode<synchronous>, transform_indices = @transform_2, window_bounds = array<i64: 1, 128>}, {pipeline_mode = #tpu.pipeline_mode<synchronous>, transform_indices = @transform_3, window_bounds = array<i64: 128, 128>}, {pipeline_mode = #tpu.pipeline_mode<synchronous>, transform_indices = @transform_4, window_bounds = array<i64: 1, 128>}, {pipeline_mode = #tpu.pipeline_mode<synchronous>, transform_indices = @transform_5, window_bounds = array<i64: 128, 128>}, {pipeline_mode = #tpu.pipeline_mode<synchronous>, transform_indices = @transform_6, window_bounds = array<i64: 1, 128>}, {pipeline_mode = #tpu.pipeline_mode<synchronous>, transform_indices = @transform_7, window_bounds = array<i64: 128, 128>}, {pipeline_mode = #tpu.pipeline_mode<synchronous>, transform_indices = @transform_8, window_bounds = array<i64: 1, 128>}, {pipeline_mode = #tpu.pipeline_mode<synchronous>, transform_indices = @transform_9, window_bounds = array<i64: 128, 128>}, {pipeline_mode = #tpu.pipeline_mode<synchronous>, transform_indices = @transform_10, window_bounds = array<i64: 1, 128>}, {transform_indices = @transform_11, window_bounds = array<i64: 16, 128>}]} {
    %0 = tpu.iota {dimensions = array<i32: 1>} : vector<1x128xi32>
    %c0_i32 = arith.constant 0 : i32
    %1 = vector.broadcast %c0_i32 : i32 to vector<1x128xi32>
    %2 = arith.cmpi eq, %0, %1 : vector<1x128xi32>
    %c1_i32 = arith.constant 1 : i32
    %3 = vector.broadcast %c1_i32 : i32 to vector<1x128xi32>
    %4 = arith.cmpi sge, %0, %3 : vector<1x128xi32>
    %c11_i32 = arith.constant 11 : i32
    %5 = vector.broadcast %c11_i32 : i32 to vector<1x128xi32>
    %6 = arith.cmpi slt, %0, %5 : vector<1x128xi32>
    %7 = arith.andi %4, %6 : vector<1x128xi1>
    %c0 = arith.constant 0 : index
    %c0_0 = arith.constant 0 : index
    %8 = vector.load %arg3[%c0, %c0_0] : memref<1x128xf32, #tpu.memory_space<vmem>>, vector<1x128xf32>
    %c0_1 = arith.constant 0 : index
    %c0_2 = arith.constant 0 : index
    %9 = vector.load %arg5[%c0_1, %c0_2] : memref<1x128xf32, #tpu.memory_space<vmem>>, vector<1x128xf32>
    %c0_3 = arith.constant 0 : index
    %c0_4 = arith.constant 0 : index
    %10 = vector.load %arg7[%c0_3, %c0_4] : memref<1x128xf32, #tpu.memory_space<vmem>>, vector<1x128xf32>
    %c0_5 = arith.constant 0 : index
    %c0_6 = arith.constant 0 : index
    %11 = vector.load %arg9[%c0_5, %c0_6] : memref<1x128xf32, #tpu.memory_space<vmem>>, vector<1x128xf32>
    %c0_7 = arith.constant 0 : index
    %c0_8 = arith.constant 0 : index
    %12 = vector.load %arg11[%c0_7, %c0_8] : memref<1x128xf32, #tpu.memory_space<vmem>>, vector<1x128xf32>
    %c0_9 = arith.constant 0 : index
    %c0_10 = arith.constant 0 : index
    %13 = vector.load %arg1[%c0_9, %c0_10] : memref<16x4xbf16, #tpu.memory_space<vmem>>, vector<16x4xbf16>
    %c0_11 = arith.constant 0 : index
    %c0_12 = arith.constant 0 : index
    %14 = vector.load %arg2[%c0_11, %c0_12] : memref<4x128xbf16, #tpu.memory_space<vmem>>, vector<4x128xbf16>
    %cst = arith.constant dense<0.000000e+00> : vector<16x128xf32>
    %15 = tpu.matmul %13, %14, %cst {dimension_numbers = #tpu.dot_dimension_numbers<[1], [0], [0], [1], [0, 0, 1, 1], [], []>} : vector<16x4xbf16>, vector<4x128xbf16>, vector<16x128xf32> -> vector<16x128xf32>
    %16 = vector.broadcast %8 : vector<1x128xf32> to vector<16x128xf32>
    %17 = arith.addf %15, %16 : vector<16x128xf32>
    %cst_13 = arith.constant 0.000000e+00 : f32
    %18 = vector.broadcast %cst_13 : f32 to vector<16x128xf32>
    %19 = arith.maximumf %17, %18 : vector<16x128xf32>
    %20 = arith.truncf %19 : vector<16x128xf32> to vector<16x128xbf16>
    %c0_14 = arith.constant 0 : index
    %c0_15 = arith.constant 0 : index
    %21 = vector.load %arg4[%c0_14, %c0_15] : memref<128x128xbf16, #tpu.memory_space<vmem>>, vector<128x128xbf16>
    %cst_16 = arith.constant dense<0.000000e+00> : vector<16x128xf32>
    %22 = tpu.matmul %20, %21, %cst_16 {dimension_numbers = #tpu.dot_dimension_numbers<[1], [0], [0], [1], [0, 0, 1, 1], [], []>} : vector<16x128xbf16>, vector<128x128xbf16>, vector<16x128xf32> -> vector<16x128xf32>
    %23 = vector.broadcast %9 : vector<1x128xf32> to vector<16x128xf32>
    %24 = arith.addf %22, %23 : vector<16x128xf32>
    %cst_17 = arith.constant 0.000000e+00 : f32
    %25 = vector.broadcast %cst_17 : f32 to vector<16x128xf32>
    %26 = arith.maximumf %24, %25 : vector<16x128xf32>
    %27 = arith.truncf %26 : vector<16x128xf32> to vector<16x128xbf16>
    %c0_18 = arith.constant 0 : index
    %c0_19 = arith.constant 0 : index
    %28 = vector.load %arg6[%c0_18, %c0_19] : memref<128x128xbf16, #tpu.memory_space<vmem>>, vector<128x128xbf16>
    %cst_20 = arith.constant dense<0.000000e+00> : vector<16x128xf32>
    %29 = tpu.matmul %27, %28, %cst_20 {dimension_numbers = #tpu.dot_dimension_numbers<[1], [0], [0], [1], [0, 0, 1, 1], [], []>} : vector<16x128xbf16>, vector<128x128xbf16>, vector<16x128xf32> -> vector<16x128xf32>
    %30 = vector.broadcast %10 : vector<1x128xf32> to vector<16x128xf32>
    %31 = arith.addf %29, %30 : vector<16x128xf32>
    %cst_21 = arith.constant 0.000000e+00 : f32
    %32 = vector.broadcast %cst_21 : f32 to vector<16x128xf32>
    %33 = arith.maximumf %31, %32 : vector<16x128xf32>
    %34 = arith.truncf %33 : vector<16x128xf32> to vector<16x128xbf16>
    %c0_22 = arith.constant 0 : index
    %c0_23 = arith.constant 0 : index
    %35 = vector.load %arg8[%c0_22, %c0_23] : memref<128x128xbf16, #tpu.memory_space<vmem>>, vector<128x128xbf16>
    %cst_24 = arith.constant dense<0.000000e+00> : vector<16x128xf32>
    %36 = tpu.matmul %34, %35, %cst_24 {dimension_numbers = #tpu.dot_dimension_numbers<[1], [0], [0], [1], [0, 0, 1, 1], [], []>} : vector<16x128xbf16>, vector<128x128xbf16>, vector<16x128xf32> -> vector<16x128xf32>
    %37 = vector.broadcast %11 : vector<1x128xf32> to vector<16x128xf32>
    %38 = arith.addf %36, %37 : vector<16x128xf32>
    %cst_25 = arith.constant 0.000000e+00 : f32
    %39 = vector.broadcast %cst_25 : f32 to vector<16x128xf32>
    %40 = arith.maximumf %38, %39 : vector<16x128xf32>
    %41 = arith.truncf %40 : vector<16x128xf32> to vector<16x128xbf16>
    %c0_26 = arith.constant 0 : index
    %c0_27 = arith.constant 0 : index
    %42 = vector.load %arg10[%c0_26, %c0_27] : memref<128x128xbf16, #tpu.memory_space<vmem>>, vector<128x128xbf16>
    %cst_28 = arith.constant dense<0.000000e+00> : vector<16x128xf32>
    %43 = tpu.matmul %41, %42, %cst_28 {dimension_numbers = #tpu.dot_dimension_numbers<[1], [0], [0], [1], [0, 0, 1, 1], [], []>} : vector<16x128xbf16>, vector<128x128xbf16>, vector<16x128xf32> -> vector<16x128xf32>
    %44 = vector.broadcast %12 : vector<1x128xf32> to vector<16x128xf32>
    %45 = arith.addf %43, %44 : vector<16x128xf32>
    %cst_29 = arith.constant -1.000000e+30 : f32
    %46 = vector.shape_cast %7 : vector<1x128xi1> to vector<1x128xi1>
    %47 = vector.broadcast %46 : vector<1x128xi1> to vector<16x128xi1>
    %48 = vector.broadcast %cst_29 : f32 to vector<16x128xf32>
    %49 = arith.select %47, %45, %48 : vector<16x128xi1>, vector<16x128xf32>
    %cst_30 = arith.constant dense<0xFF800000> : vector<16xf32>
    %50 = vector.multi_reduction <maximumf>, %49, %cst_30 [1] : vector<16x128xf32> to vector<16xf32>
    %51 = vector.shape_cast %50 : vector<16xf32> to vector<16x1xf32>
    %cst_31 = arith.constant 0.000000e+00 : f32
    %52 = vector.broadcast %cst_31 : f32 to vector<16x128xf32>
    %53 = arith.subf %52, %45 : vector<16x128xf32>
    %54 = vector.broadcast %51 : vector<16x1xf32> to vector<16x128xf32>
    %55 = arith.subf %49, %54 : vector<16x128xf32>
    %56 = vector.shape_cast %2 : vector<1x128xi1> to vector<1x128xi1>
    %57 = vector.broadcast %56 : vector<1x128xi1> to vector<16x128xi1>
    %58 = arith.select %57, %53, %55 : vector<16x128xi1>, vector<16x128xf32>
    %59 = math.exp %58 : vector<16x128xf32>
    %cst_32 = arith.constant 0.000000e+00 : f32
    %60 = vector.shape_cast %7 : vector<1x128xi1> to vector<1x128xi1>
    %61 = vector.broadcast %60 : vector<1x128xi1> to vector<16x128xi1>
    %62 = vector.broadcast %cst_32 : f32 to vector<16x128xf32>
    %63 = arith.select %61, %59, %62 : vector<16x128xi1>, vector<16x128xf32>
    %cst_33 = arith.constant dense<0.000000e+00> : vector<16xf32>
    %64 = vector.multi_reduction <add>, %63, %cst_33 [1] : vector<16x128xf32> to vector<16xf32>
    %65 = vector.shape_cast %64 : vector<16xf32> to vector<16x1xf32>
    %cst_34 = arith.constant 1.000000e+00 : f32
    %66 = vector.shape_cast %2 : vector<1x128xi1> to vector<1x128xi1>
    %67 = vector.broadcast %66 : vector<1x128xi1> to vector<16x128xi1>
    %68 = vector.broadcast %cst_34 : f32 to vector<16x128xf32>
    %69 = arith.select %67, %68, %59 : vector<16x128xi1>, vector<16x128xf32>
    %cst_35 = arith.constant 1.000000e+00 : f32
    %70 = vector.broadcast %cst_35 : f32 to vector<16x128xf32>
    %71 = arith.addf %70, %59 : vector<16x128xf32>
    %72 = vector.shape_cast %2 : vector<1x128xi1> to vector<1x128xi1>
    %73 = vector.broadcast %72 : vector<1x128xi1> to vector<16x128xi1>
    %74 = vector.shape_cast %65 : vector<16x1xf32> to vector<16x1xf32>
    %75 = vector.broadcast %74 : vector<16x1xf32> to vector<16x128xf32>
    %76 = arith.select %73, %71, %75 : vector<16x128xi1>, vector<16x128xf32>
    %77 = arith.divf %69, %76 : vector<16x128xf32>
    %c0_36 = arith.constant 0 : index
    %c0_37 = arith.constant 0 : index
    %78 = vector.load %arg12[%c0_36, %c0_37] : memref<16x128xf32, #tpu.memory_space<vmem>>, vector<16x128xf32>
    tpu.vector_store %arg12[%c0_36, %c0_37], %77 {strides = array<i32>} : memref<16x128xf32, #tpu.memory_space<vmem>>, vector<16x128xf32>,
    return
  }
  func.func @transform_0(%arg0: i32) -> (i32, i32) {
    %c0_i32 = arith.constant 0 : i32
    %c0_i32_0 = arith.constant 0 : i32
    return %arg0, %c0_i32 : i32, i32
  }
  func.func @transform_1(%arg0: i32) -> (i32, i32) {
    %c0_i32 = arith.constant 0 : i32
    %c0_i32_0 = arith.constant 0 : i32
    %c0_i32_1 = arith.constant 0 : i32
    return %c0_i32, %c0_i32_0 : i32, i32
  }
  func.func @transform_2(%arg0: i32) -> (i32, i32) {
    %c0_i32 = arith.constant 0 : i32
    %c0_i32_0 = arith.constant 0 : i32
    %c0_i32_1 = arith.constant 0 : i32
    return %c0_i32, %c0_i32_0 : i32, i32
  }
  func.func @transform_3(%arg0: i32) -> (i32, i32) {
    %c0_i32 = arith.constant 0 : i32
    %c0_i32_0 = arith.constant 0 : i32
    %c0_i32_1 = arith.constant 0 : i32
    return %c0_i32, %c0_i32_0 : i32, i32
  }
  func.func @transform_4(%arg0: i32) -> (i32, i32) {
    %c0_i32 = arith.constant 0 : i32
    %c0_i32_0 = arith.constant 0 : i32
    %c0_i32_1 = arith.constant 0 : i32
    return %c0_i32, %c0_i32_0 : i32, i32
  }
  func.func @transform_5(%arg0: i32) -> (i32, i32) {
    %c0_i32 = arith.constant 0 : i32
    %c0_i32_0 = arith.constant 0 : i32
    %c0_i32_1 = arith.constant 0 : i32
    return %c0_i32, %c0_i32_0 : i32, i32
  }
  func.func @transform_6(%arg0: i32) -> (i32, i32) {
    %c0_i32 = arith.constant 0 : i32
    %c0_i32_0 = arith.constant 0 : i32
    %c0_i32_1 = arith.constant 0 : i32
    return %c0_i32, %c0_i32_0 : i32, i32
  }
  func.func @transform_7(%arg0: i32) -> (i32, i32) {
    %c0_i32 = arith.constant 0 : i32
    %c0_i32_0 = arith.constant 0 : i32
    %c0_i32_1 = arith.constant 0 : i32
    return %c0_i32, %c0_i32_0 : i32, i32
  }
  func.func @transform_8(%arg0: i32) -> (i32, i32) {
    %c0_i32 = arith.constant 0 : i32
    %c0_i32_0 = arith.constant 0 : i32
    %c0_i32_1 = arith.constant 0 : i32
    return %c0_i32, %c0_i32_0 : i32, i32
  }
  func.func @transform_9(%arg0: i32) -> (i32, i32) {
    %c0_i32 = arith.constant 0 : i32
    %c0_i32_0 = arith.constant 0 : i32
    %c0_i32_1 = arith.constant 0 : i32
    return %c0_i32, %c0_i32_0 : i32, i32
  }
  func.func @transform_10(%arg0: i32) -> (i32, i32) {
    %c0_i32 = arith.constant 0 : i32
    %c0_i32_0 = arith.constant 0 : i32
    %c0_i32_1 = arith.constant 0 : i32
    return %c0_i32, %c0_i32_0 : i32, i32
  }
  func.func @transform_11(%arg0: i32) -> (i32, i32) {
    %c0_i32 = arith.constant 0 : i32
    %c0_i32_0 = arith.constant 0 : i32
    return %arg0, %c0_i32 : i32, i32
  }
}

</mosaic_0001>

<bundles_post_ra>
// kernel: tpu_custom_call.1
= control target key start
LH: loop header
LB: loop body
LE: loop exit
PB: predicated region body
PF: predicated region fallthrough
CT: control target
= control target key end

     0   :  { %16 = vsyncpa [#allocation3], 0  ;;  %s1254_s0 = inlined_call_operand.vmem [shape: bf16[16,4], index: 0, kind: input, shape index: {}]   ;;  %s1255_s1 = inlined_call_operand.vmem [shape: bf16[4,128], index: 1, kind: input, shape index: {}]   ;;  %s1256_s2 = inlined_call_operand.vmem [shape: f32[1,128], index: 2, kind: input, shape index: {}]   ;;  %s1257_s3 = inlined_call_operand.hbm [shape: bf16[128,128], index: 3, kind: input, shape index: {}]   ;;  %s1258_s4 = inlined_call_operand.vmem [shape: f32[1,128], index: 4, kind: input, shape index: {}]   ;;  %s1259_s5 = inlined_call_operand.hbm [shape: bf16[128,128], index: 5, kind: input, shape index: {}]   ;;  %s1260_s6 = inlined_call_operand.vmem [shape: f32[1,128], index: 6, kind: input, shape index: {}]   ;;  %s1261_s7 = inlined_call_operand.hbm [shape: bf16[128,128], index: 7, kind: input, shape index: {}]   ;;  %s1262_s8 = inlined_call_operand.vmem [shape: f32[1,128], index: 8, kind: input, shape index: {}]   ;;  %s1263_s9 = inlined_call_operand.hbm [shape: bf16[128,128], index: 9, kind: input, shape index: {}]   ;;  %s1264_s10 = inlined_call_operand.vmem [shape: f32[1,128], index: 10, kind: input, shape index: {}]   ;;  %s1265_s11 = inlined_call_operand.hbm [shape: f32[16,128], index: 11, kind: output, shape index: {}]  }
   0x1   :  { %17 = vsyncpa [#allocation6], 0 }
   0x2   :  { %18 = vsyncpa [#allocation9], 0 }
   0x3   :  { %19 = vsyncpa [#allocation4], 0  ;;  %s1015_s17 = smov [#allocation5]   ;;  %s1016_s19 = smov [#allocation2]  }
   0x4   :  { %s45_s18 = sshll.u32 %s1015_s17, 4  ;;  %s31_s20 = sshll.u32 %s1016_s19, 4  ;;  %s46_s18 = int_to_ptr.vmem [resolvable:$true] %s45_s18  ;;  %s1086_s20 = int_to_ptr.vmem [resolvable:$true] %s31_s20 }
   0x5   :  { %s897_s23 = scalar_lea.hbm %s1259_s5, 1024 }
   0x6   :  { %p898_p0 = scmp.ne.s32.totalorder %s1259_s5, %s897_s23  ;;  %p901_p1 = scmp.lt.u32.totalorder %s897_s23, %s1259_s5 }
   0x8   :  { %p903_p2 = pnand %p901_p1, %p898_p0 }
   0xa   :  { %906 = shalt.err (!%p903_p2)
}
   0xb   :  { %s907_s28 = scalar_lea.vmem %s46_s18, 1024  ;;  %p912_p4 = scmp.lt.s32.totalorder %s46_s18, %s46_s18 }
   0xc   :  { %p908_p3 = scmp.ne.s32.totalorder %s46_s18, %s907_s28  ;;  %p913_p5 = scmp.lt.s32.totalorder %s907_s28, %s907_s28 }
   0xe   :  { %p914_p6 = por %p913_p5, %p912_p4 }
  0x10   :  { %p915_p7 = pnand %p914_p6, %p908_p3 }
  0x12   :  { %918 = shalt.err (!%p915_p7)
}
  0x13   :  { %s1017_s29 = smov 64   ;;  %s1018_s30 = smov 4  }
  0x14   :  { %51 = dma.hbm_to_vmem [thread:$0]  %s1259_s5, 1024, %s46_s18, [#allocation6], %s1017_s29, %s1017_s29, %s1018_s30  }
  0x15   :  { %s919_s16 = scalar_lea.hbm %s1257_s3, 1024 }
  0x16   :  { %p920_p8 = scmp.ne.s32.totalorder %s1257_s3, %s919_s16  ;;  %p923_p9 = scmp.lt.u32.totalorder %s919_s16, %s1257_s3 }
  0x18   :  { %p925_p10 = pnand %p923_p9, %p920_p8 }
  0x1a   :  { %928 = shalt.err (!%p925_p10)
}
  0x1b   :  { %s929_s23 = scalar_lea.vmem %s1086_s20, 1024  ;;  %p934_p12 = scmp.lt.s32.totalorder %s1086_s20, %s1086_s20 }
  0x1c   :  { %p930_p11 = scmp.ne.s32.totalorder %s1086_s20, %s929_s23  ;;  %p935_p13 = scmp.lt.s32.totalorder %s929_s23, %s929_s23 }
  0x1e   :  { %p936_p0 = por %p935_p13, %p934_p12 }
  0x20   :  { %p937_p1 = pnand %p936_p0, %p930_p11 }
  0x22   :  { %940 = shalt.err (!%p937_p1)
}
  0x23   :  { %37 = dma.hbm_to_vmem [thread:$0]  %s1257_s3, 1024, %s1086_s20, [#allocation3], %s1017_s29, %s1017_s29, %s1018_s30  }
  0x24   :  { %s1019_s24 = smov [#allocation7]   ;;  %s1020_s26 = smov [#allocation8]  }
  0x25   :  { %s59_s25 = sshll.u32 %s1019_s24, 4  ;;  %s73_s27 = sshll.u32 %s1020_s26, 4  ;;  %s60_s25 = int_to_ptr.vmem [resolvable:$true] %s59_s25  ;;  %s1123_s27 = int_to_ptr.vmem [resolvable:$true] %s73_s27 }
  0x26   :  { %s941_s13 = scalar_lea.hbm %s1261_s7, 1024 }
  0x27   :  { %p942_p2 = scmp.ne.s32.totalorder %s1261_s7, %s941_s13  ;;  %p945_p3 = scmp.lt.u32.totalorder %s941_s13, %s1261_s7 }
  0x29   :  { %p947_p4 = pnand %p945_p3, %p942_p2 }
  0x2b   :  { %950 = shalt.err (!%p947_p4)
}
  0x2c   :  { %s951_s3 = scalar_lea.vmem %s60_s25, 1024  ;;  %p956_p6 = scmp.lt.s32.totalorder %s60_s25, %s60_s25 }
  0x2d   :  { %p952_p5 = scmp.ne.s32.totalorder %s60_s25, %s951_s3  ;;  %p957_p7 = scmp.lt.s32.totalorder %s951_s3, %s951_s3 }
  0x2f   :  { %p958_p8 = por %p957_p7, %p956_p6 }
  0x31   :  { %p959_p9 = pnand %p958_p8, %p952_p5 }
  0x33   :  { %962 = shalt.err (!%p959_p9)
}
  0x34   :  { %65 = dma.hbm_to_vmem [thread:$0]  %s1261_s7, 1024, %s60_s25, [#allocation6], %s1017_s29, %s1017_s29, %s1018_s30  }
  0x35   :  { %s963_s23 = scalar_lea.hbm %s1263_s9, 1024 }
  0x36   :  { %p964_p10 = scmp.ne.s32.totalorder %s1263_s9, %s963_s23  ;;  %p967_p11 = scmp.lt.u32.totalorder %s963_s23, %s1263_s9 }
  0x38   :  { %p969_p12 = pnand %p967_p11, %p964_p10 }
  0x3a   :  { %972 = shalt.err (!%p969_p12)
}
  0x3b   :  { %s973_s28 = scalar_lea.vmem %s1123_s27, 1024  ;;  %p978_p0 = scmp.lt.s32.totalorder %s1123_s27, %s1123_s27 }
  0x3c   :  { %p974_p13 = scmp.ne.s32.totalorder %s1123_s27, %s973_s28  ;;  %p979_p1 = scmp.lt.s32.totalorder %s973_s28, %s973_s28 }
  0x3e   :  { %p980_p2 = por %p979_p1, %p978_p0 }
  0x40   :  { %p981_p3 = pnand %p980_p2, %p974_p13 }
  0x42   :  { %984 = shalt.err (!%p981_p3)
}
  0x43   :  { %79 = dma.hbm_to_vmem [thread:$0]  %s1263_s9, 1024, %s1123_s27, [#allocation9], %s1017_s29, %s1017_s29, %s1018_s30  }
  0x44   :  { %1007 = dma.done.wait [#allocation3], 1024  }
  0x45   :  { %1008 = vsyncadd [#allocation3], 4294966272 }
  0x46   :  { %1009 = dma.done.wait [#allocation6], 2048  }
  0x47   :  { %1010 = vsyncadd [#allocation6], 4294965248 }
  0x48   :  { %1011 = dma.done.wait [#allocation9], 1024  }
  0x49   :  { %1012 = vsyncadd [#allocation9], 4294966272  ;;  %v1021_v0 = vmov 0.0   ;;  %vm1022_vm0 = vmmov 0   ;;  %vm124_vm1 = vcmask 1041408   ;;  %v856_v3 = vld [vmem:[%s1254_s0] sm:$0xff]  }
  0x4a   :  { %759 = vmatprep.subr.bf16.mxu0 %v1021_v0  ;;  %761 = vmatprep.mubr.msk.bf16.mxu0 %vm1022_vm0, %v1021_v0  ;;  %v108_v1 = vld [vmem:[%s1255_s1] sm:$0x3]  ;;  %vm120_vm2 = vcmask 31744   ;;  %v857_v4 = vld [vmem:[#allocation2] sm:$0xff]   ;;  %v858_v5 = vld [vmem:[#allocation2 + $0x8] sm:$0xff]  }
  0x4b   :  { %765 = vmatprep.subr.bf16.mxu1 %v1021_v0  ;;  %781 = vmatprep.mubr.msk.bf16.mxu1 %vm1022_vm0, %v1021_v0  ;;  %v126_v2 = vsel %vm124_vm1, %v108_v1, 0  ;;  %v859_v6 = vld [vmem:[#allocation2 + $0x10] sm:$0xff]   ;;  %v860_v7 = vld [vmem:[#allocation2 + $0x18] sm:$0xff]   ;;  %v861_v8 = vld [vmem:[#allocation2 + $0x20] sm:$0xff]  }
  0x4c   :  { %760 = vmatpush3.bf16.msra.mxu0 %v126_v2  ;;  %766 = vmatpush3.bf16.msra.mxu1 %v857_v4  ;;  %v862_v9 = vld [vmem:[#allocation2 + $0x28] sm:$0xff]   ;;  %v863_v10 = vld [vmem:[#allocation2 + $0x30] sm:$0xff]   ;;  %v864_v11 = vld [vmem:[#allocation2 + $0x38] sm:$0xff]  }
  0x4d   :  { %785 = vmatprep.subr.bf16.mxu0 %v1021_v0  ;;  %767 = vmatprep.subr.bf16.mxu1 %v1021_v0  ;;  %v865_v12 = vld [vmem:[#allocation5] sm:$0xff]   ;;  %v866_v13 = vld [vmem:[#allocation5 + $0x8] sm:$0xff]   ;;  %v867_v14 = vld [vmem:[#allocation5 + $0x10] sm:$0xff]  }
  0x4e   :  { %v868_v15 = vld [vmem:[#allocation5 + $0x18] sm:$0xff]   ;;  %v869_v16 = vld [vmem:[#allocation5 + $0x20] sm:$0xff]   ;;  %v870_v17 = vld [vmem:[#allocation5 + $0x28] sm:$0xff]  }
  0x4f   :  { %762 = vmatmul.mubr.msk.bf16.vlgmr.msra.gmra.mrb[0].mxu0 %vm120_vm2, %v856_v3  ;;  %v682_v18 = vld [vmem:[%s1256_s2] ss:$0 sm:$0xff]  ;;  %v872_v29 = vld [vmem:[#allocation5 + $0x38] sm:$0xff]   ;;  %v873_v30 = vld [vmem:[#allocation7] sm:$0xff]  }
  0x50   :  { %801 = vmatprep.mubr.msk.bf16.mxu0 %vm1022_vm0, %v1021_v0  ;;  %768 = vmatpush3.bf16.msra.mxu1 %v858_v5  ;;  %v871_v28 = vld [vmem:[#allocation5 + $0x30] sm:$0xff]   ;;  %v874_v31 = vld [vmem:[#allocation7 + $0x8] sm:$0xff]   ;;  %v876_v33 = vld [vmem:[#allocation7 + $0x18] sm:$0xff]  }
  0x51   :  { %769 = vmatprep.subr.bf16.mxu1 %v1021_v0  ;;  %786 = vmatpush3.bf16.msra.mxu0 %v865_v12  ;;  %v875_v32 = vld [vmem:[#allocation7 + $0x10] sm:$0xff]   ;;  %v877_v34 = vld [vmem:[#allocation7 + $0x20] sm:$0xff]   ;;  %v878_v35 = vld [vmem:[#allocation7 + $0x28] sm:$0xff]  }
  0x52   :  { %787 = vmatprep.subr.bf16.mxu0 %v1021_v0  ;;  %v685_v36 = vld [vmem:[%s1258_s4] ss:$0 sm:$0xff]  ;;  %v880_v47 = vld [vmem:[#allocation7 + $0x38] sm:$0xff]   ;;  %v881_v48 = vld [vmem:[#allocation8] sm:$0xff]  }
  0x53   :  { %v879_v46 = vld [vmem:[#allocation7 + $0x30] sm:$0xff]   ;;  %v882_v49 = vld [vmem:[#allocation8 + $0x8] sm:$0xff]   ;;  %v884_v51 = vld [vmem:[#allocation8 + $0x18] sm:$0xff]  }
  0x54   :  { %770 = vmatpush3.bf16.msra.mxu1 %v859_v6  ;;  %v883_v50 = vld [vmem:[#allocation8 + $0x10] sm:$0xff]   ;;  %v885_v52 = vld [vmem:[#allocation8 + $0x20] sm:$0xff]   ;;  %v886_v53 = vld [vmem:[#allocation8 + $0x28] sm:$0xff]  }
  0x55   :  { %771 = vmatprep.subr.bf16.mxu1 %v1021_v0  ;;  %788 = vmatpush3.bf16.msra.mxu0 %v866_v13  ;;  %v694_v54 = vld [vmem:[%s1260_s6] ss:$0 sm:$0xff]  ;;  %v888_v2 = vld [vmem:[#allocation8 + $0x38] sm:$0xff]   ;;  %v95_v13 = vlaneseq }
  0x56   :  { %789 = vmatprep.subr.bf16.mxu0 %v1021_v0  ;;  %v887_v1 = vld [vmem:[#allocation8 + $0x30] sm:$0xff]  }
  0x57   :  { %v703_v3 = vld [vmem:[%s1262_s8] ss:$0 sm:$0xff]  ;;  %s1023_s8 = smov [#allocation10]  }
  0x58   :  { %772 = vmatpush3.bf16.msra.mxu1 %v860_v7 }
  0x59   :  { %773 = vmatprep.subr.bf16.mxu1 %v1021_v0  ;;  %790 = vmatpush3.bf16.msra.mxu0 %v867_v14  ;;  %v96_v14 = vand.u32 127, %v95_v13 }
  0x5a   :  { %791 = vmatprep.subr.bf16.mxu0 %v1021_v0 }
  0x5b   :  { %vm98_vm3 = vcmp.ge.s32.totalorder %v96_v14, 1  ;;  %vm99_vm4 = vcmp.lt.s32.totalorder %v96_v14, 11  ;;  %vm97_vm6 = vcmp.eq.s32.totalorder %v96_v14, 0 }
  0x5c   :  { %774 = vmatpush3.bf16.msra.mxu1 %v861_v8  ;;  %vm1224_vm5 = vmand %vm98_vm3, %vm99_vm4 }
  0x5d   :  { %775 = vmatprep.subr.bf16.mxu1 %v1021_v0  ;;  %792 = vmatpush3.bf16.msra.mxu0 %v868_v15 }
  0x5e   :  { %793 = vmatprep.subr.bf16.mxu0 %v1021_v0 }
  0x60   :  { %776 = vmatpush3.bf16.msra.mxu1 %v862_v9 }
  0x61   :  { %777 = vmatprep.subr.bf16.mxu1 %v1021_v0  ;;  %794 = vmatpush3.bf16.msra.mxu0 %v869_v16 }
  0x62   :  { %795 = vmatprep.subr.bf16.mxu0 %v1021_v0 }
  0x64   :  { %778 = vmatpush3.bf16.msra.mxu1 %v863_v10 }
  0x65   :  { %779 = vmatprep.subr.bf16.mxu1 %v1021_v0  ;;  %796 = vmatpush3.bf16.msra.mxu0 %v870_v17 }
  0x66   :  { %797 = vmatprep.subr.bf16.mxu0 %v1021_v0 }
  0x68   :  { %780 = vmatpush3.bf16.msra.mxu1 %v864_v11 }
  0x69   :  { %805 = vmatprep.subr.bf16.mxu1 %v1021_v0  ;;  %798 = vmatpush3.bf16.msra.mxu0 %v871_v28 }
  0x6a   :  { %799 = vmatprep.subr.bf16.mxu0 %v1021_v0 }
  0x6d   :  { %800 = vmatpush3.bf16.msra.mxu0 %v872_v29 }
  0x6e   :  { %825 = vmatprep.subr.bf16.mxu0 %v1021_v0 }
 0x122   :  { %v162_v19 = vpop.f32.mrb[0].mxu0 }
 0x123   :  { %v163_v20 = vadd.f32 %v682_v18, %v162_v19  ;;  %v763_v21 = vpop.f32.mrb[1].mxu0 }
 0x124   :  { %v165_v22 = vpop.f32.mrb[2].mxu0 }
 0x125   :  { %v166_v23 = vadd.f32 %v682_v18, %v165_v22  ;;  %v764_v24 = vpop.f32.mrb[3].mxu0  ;;  %v169_v25 = vmax.f32 %v163_v20, 0.0 }
 0x127   :  { %v170_v26 = vmax.f32 %v166_v23, 0.0 }
 0x129   :  { %v171_v27 = vpack.c.bf16 %v170_v26, %v169_v25 }
 0x12b   :  { %782 = vmatmul.mubr.bf16.vlgmr.msra.gmra.mrb[0].mxu1 %v171_v27 }
 0x12c   :  { %821 = vmatprep.mubr.msk.bf16.mxu1 %vm1022_vm0, %v1021_v0  ;;  %806 = vmatpush3.bf16.msra.mxu1 %v873_v30 }
 0x12d   :  { %807 = vmatprep.subr.bf16.mxu1 %v1021_v0 }
 0x130   :  { %808 = vmatpush3.bf16.msra.mxu1 %v874_v31 }
 0x131   :  { %809 = vmatprep.subr.bf16.mxu1 %v1021_v0 }
 0x134   :  { %810 = vmatpush3.bf16.msra.mxu1 %v875_v32 }
 0x135   :  { %811 = vmatprep.subr.bf16.mxu1 %v1021_v0 }
 0x138   :  { %812 = vmatpush3.bf16.msra.mxu1 %v876_v33 }
 0x139   :  { %813 = vmatprep.subr.bf16.mxu1 %v1021_v0 }
 0x13c   :  { %814 = vmatpush3.bf16.msra.mxu1 %v877_v34 }
 0x13d   :  { %815 = vmatprep.subr.bf16.mxu1 %v1021_v0 }
 0x140   :  { %816 = vmatpush3.bf16.msra.mxu1 %v878_v35 }
 0x141   :  { %817 = vmatprep.subr.bf16.mxu1 %v1021_v0 }
 0x144   :  { %818 = vmatpush3.bf16.msra.mxu1 %v879_v46 }
 0x145   :  { %819 = vmatprep.subr.bf16.mxu1 %v1021_v0 }
 0x148   :  { %820 = vmatpush3.bf16.msra.mxu1 %v880_v47 }
 0x1fe   :  { %v276_v37 = vpop.f32.mrb[0].mxu1 }
 0x1ff   :  { %v277_v38 = vadd.f32 %v685_v36, %v276_v37  ;;  %v783_v39 = vpop.f32.mrb[1].mxu1 }
 0x200   :  { %v279_v40 = vpop.f32.mrb[2].mxu1 }
 0x201   :  { %v280_v41 = vadd.f32 %v685_v36, %v279_v40  ;;  %v784_v42 = vpop.f32.mrb[3].mxu1  ;;  %v283_v43 = vmax.f32 %v277_v38, 0.0 }
 0x203   :  { %v284_v44 = vmax.f32 %v280_v41, 0.0 }
 0x205   :  { %v285_v45 = vpack.c.bf16 %v284_v44, %v283_v43 }
 0x207   :  { %802 = vmatmul.mubr.bf16.vlgmr.msra.gmra.mrb[4].mxu0 %v285_v45 }
 0x208   :  { %841 = vmatprep.mubr.msk.bf16.mxu0 %vm1022_vm0, %v1021_v0  ;;  %826 = vmatpush3.bf16.msra.mxu0 %v881_v48 }
 0x209   :  { %827 = vmatprep.subr.bf16.mxu0 %v1021_v0 }
 0x20c   :  { %828 = vmatpush3.bf16.msra.mxu0 %v882_v49 }
 0x20d   :  { %829 = vmatprep.subr.bf16.mxu0 %v1021_v0 }
 0x210   :  { %830 = vmatpush3.bf16.msra.mxu0 %v883_v50 }
 0x211   :  { %831 = vmatprep.subr.bf16.mxu0 %v1021_v0 }
 0x214   :  { %832 = vmatpush3.bf16.msra.mxu0 %v884_v51 }
 0x215   :  { %833 = vmatprep.subr.bf16.mxu0 %v1021_v0 }
 0x218   :  { %834 = vmatpush3.bf16.msra.mxu0 %v885_v52 }
 0x219   :  { %835 = vmatprep.subr.bf16.mxu0 %v1021_v0 }
 0x21c   :  { %836 = vmatpush3.bf16.msra.mxu0 %v886_v53 }
 0x21d   :  { %837 = vmatprep.subr.bf16.mxu0 %v1021_v0 }
 0x220   :  { %838 = vmatpush3.bf16.msra.mxu0 %v887_v1 }
 0x221   :  { %839 = vmatprep.subr.bf16.mxu0 %v1021_v0  ;;  %v712_v0 = vld [vmem:[%s1264_s10] ss:$0 sm:$0xff]  ;;  %s668_s10 = sshll.u32 %s1023_s8, 4  ;;  %s669_s10 = int_to_ptr.vmem [resolvable:$true] %s668_s10 }
 0x222   :  { %s985_s17 = scalar_lea.vmem %s669_s10, 256  ;;  %p990_p5 = scmp.lt.s32.totalorder %s669_s10, %s669_s10 }
 0x223   :  { %p986_p4 = scmp.ne.s32.totalorder %s669_s10, %s985_s17  ;;  %p991_p6 = scmp.lt.s32.totalorder %s985_s17, %s985_s17 }
 0x224   :  { %840 = vmatpush3.bf16.msra.mxu0 %v888_v2 }
 0x225   :  { %p992_p7 = por %p991_p6, %p990_p5 }
 0x227   :  { %p993_p8 = pnand %p992_p7, %p986_p4 }
 0x2da   :  { %v390_v55 = vpop.f32.mrb[4].mxu0 }
 0x2db   :  { %v391_v56 = vadd.f32 %v694_v54, %v390_v55  ;;  %v803_v57 = vpop.f32.mrb[5].mxu0 }
 0x2dc   :  { %v393_v58 = vpop.f32.mrb[6].mxu0 }
 0x2dd   :  { %v394_v59 = vadd.f32 %v694_v54, %v393_v58  ;;  %v804_v60 = vpop.f32.mrb[7].mxu0  ;;  %v397_v61 = vmax.f32 %v391_v56, 0.0 }
 0x2df   :  { %v398_v62 = vmax.f32 %v394_v59, 0.0 }
 0x2e1   :  { %v399_v63 = vpack.c.bf16 %v398_v62, %v397_v61 }
 0x2e3   :  { %822 = vmatmul.mubr.bf16.vlgmr.msra.gmra.mrb[4].mxu1 %v399_v63 }
 0x3b6   :  { %v504_v4 = vpop.f32.mrb[4].mxu1 }
 0x3b7   :  { %v505_v5 = vadd.f32 %v703_v3, %v504_v4  ;;  %v823_v6 = vpop.f32.mrb[5].mxu1 }
 0x3b8   :  { %v507_v7 = vpop.f32.mrb[6].mxu1 }
 0x3b9   :  { %v508_v8 = vadd.f32 %v703_v3, %v507_v7  ;;  %v824_v9 = vpop.f32.mrb[7].mxu1  ;;  %v511_v10 = vmax.f32 %v505_v5, 0.0 }
 0x3bb   :  { %v512_v11 = vmax.f32 %v508_v8, 0.0 }
 0x3bd   :  { %v513_v12 = vpack.c.bf16 %v512_v11, %v511_v10 }
 0x3bf   :  { %842 = vmatmul.mubr.bf16.vlgmr.msra.gmra.mrb[8].mxu0 %v513_v12 }
 0x492   :  { %v618_v15 = vpop.f32.mrb[8].mxu0 }
 0x493   :  { %v619_v17 = vadd.f32 %v712_v0, %v618_v15  ;;  %v843_v18 = vpop.f32.mrb[9].mxu0 }
 0x494   :  { %v621_v19 = vpop.f32.mrb[10].mxu0 }
 0x495   :  { %v622_v20 = vadd.f32 %v712_v0, %v621_v19  ;;  %v844_v21 = vpop.f32.mrb[11].mxu0  ;;  %v627_v22 = vsel %vm1224_vm5, %v619_v17, -1e+30  ;;  %v633_v25 = vsub.f32 0.0, %v619_v17 }
 0x496   :  { %629 = vmax.xlane.f32.xlu0 %v627_v22 }
 0x497   :  { %v628_v23 = vsel %vm1224_vm5, %v622_v20, -1e+30  ;;  %v634_v30 = vsub.f32 0.0, %v622_v20 }
 0x49a   :  { %631 = vmax.xlane.f32.xlu0 %v628_v23 }
 0x523   :  { %v630_v24 = vpop.xlane.xlu0 %629 }
 0x524   :  { %v635_v26 = vsub.f32 %v627_v22, %v630_v24 }
 0x526   :  { %v639_v27 = vsel %vm97_vm6, %v633_v25, %v635_v26 }
 0x527   :  { %v641_v28 = vmul.f32 1.442695, %v639_v27  ;;  %v632_v29 = vpop.xlane.xlu0 %631 }
 0x528   :  { %v636_v31 = vsub.f32 %v628_v23, %v632_v29 }
 0x529   :  { %889 = vpow2.f32 %v641_v28 }
 0x52a   :  { %v640_v32 = vsel %vm97_vm6, %v634_v30, %v636_v31 }
 0x52b   :  { %v643_v33 = vmul.f32 1.442695, %v640_v32 }
 0x52d   :  { %891 = vpow2.f32 %v643_v33 }
 0x533   :  { %v890_v34 = vpop.eup %889 }
 0x534   :  { %v645_v35 = vsel %vm1224_vm5, %v890_v34, 0.0  ;;  %v653_v38 = vadd.f32 1.0, %v890_v34  ;;  %v651_v45 = vsel %vm97_vm6, 1.0, %v890_v34 }
 0x535   :  { %647 = vadd.xlane.f32.xlu1 %v645_v35 }
 0x537   :  { %v892_v36 = vpop.eup %891 }
 0x538   :  { %v646_v37 = vsel %vm1224_vm5, %v892_v36, 0.0  ;;  %v654_v41 = vadd.f32 1.0, %v892_v36  ;;  %v652_v48 = vsel %vm97_vm6, 1.0, %v892_v36 }
 0x539   :  { %649 = vadd.xlane.f32.xlu1 %v646_v37 }
 0x5c2   :  { %v648_v39 = vpop.xlane.xlu1 %647 }
 0x5c3   :  { %v655_v40 = vsel %vm97_vm6, %v653_v38, %v648_v39 }
 0x5c4   :  { %893 = vrcp.f32 %v655_v40 }
 0x5c6   :  { %v650_v42 = vpop.xlane.xlu1 %649 }
 0x5c7   :  { %v656_v43 = vsel %vm97_vm6, %v654_v41, %v650_v42 }
 0x5c8   :  { %895 = vrcp.f32 %v656_v43 }
 0x5ce   :  { %v894_v44 = vpop.eup %893 }
 0x5cf   :  { %v658_v46 = vmul.f32 %v894_v44, %v651_v45 }
 0x5d1   :  { %661 = vst [vmem:[#allocation10] sm:$0xff] %v658_v46 }
 0x5d2   :  { %v896_v47 = vpop.eup %895 }
 0x5d3   :  { %v660_v49 = vmul.f32 %v896_v47, %v652_v48 }
 0x5d5   :  { %662 = vst [vmem:[#allocation10 + $0x8] sm:$0xff] %v660_v49 }
 0x5d6   :  { %996 = shalt.err (!%p993_p8)
}
 0x5d7   :  { %s997_s19 = scalar_lea.hbm %s1265_s11, 256 }
 0x5d8   :  { %p998_p9 = scmp.ne.s32.totalorder %s1265_s11, %s997_s19  ;;  %p1001_p10 = scmp.lt.u32.totalorder %s997_s19, %s1265_s11 }
 0x5da   :  { %p1003_p11 = pnand %p1001_p10, %p998_p9 }
 0x5dc   :  { %1006 = shalt.err (!%p1003_p11)
}
 0x5dd   :  { %s1024_s18 = smov 128   ;;  %s1025_s24 = smov 8  }
 0x5de   :  { %674 = dma.vmem_to_hbm [thread:$0]  %s669_s10, 256, %s1265_s11, [#allocation4], %s1024_s18, %s1024_s18, %s1025_s24  }
 0x5df   :  { %1013 = dma.done.wait [#allocation4], 256  }
 0x5e0   :  { %1014 = vsyncadd [#allocation4], 4294967040 }
 0x5e1   :  { %678 = vsyncpa [#allocation3], 1 }
 0x5e2   :  { %679 = vsyncpa [#allocation6], 1 }
 0x5e3   :  { %680 = vsyncpa [#allocation9], 1 }
 0x5e4   :  { %681 = vsyncpa [#allocation4], 1 }

</bundles_post_ra>
